<compile_context>
chip_gen: v5e
topology: v5e:2x2
jax: 0.10.0
libtpu: 0.0.40
codegen_flags: <defaults>
</compile_context>

<pallas_src>
import functools
import math

import jax
import jax.numpy as jnp
from jax.experimental import pallas as pl
from jax.experimental.pallas import tpu as pltpu


def _embed_gather_kernel(ids_ref, table_hbm, out_ref, buf, sem, *,
                         scale: float, rows: int):
    """One grid step: gather `rows` embedding rows from HBM, scale, store.

    ids_ref   : (N_pad,) int32 scalar-prefetch ref in SMEM (all token ids).
    table_hbm : (vocab, D) embedding table, left in HBM (pl.ANY).
    out_ref   : (rows, D) output tile for this chunk of tokens.
    buf       : (rows, D) VMEM gather scratch.
    sem       : (rows,) DMA semaphores, one per gathered row.
    """
    base = pl.program_id(0) * rows

    # Issue every row gather first so all `rows` DMAs are in flight at once
    # (small row DMAs are latency-dominated; depth hides that latency).
    @pl.loop(0, rows)
    def _issue(t):
        row = ids_ref[base + t]
        pltpu.make_async_copy(table_hbm.at[row], buf.at[t], sem.at[t]).start()

    # Then wait for all of them.
    @pl.loop(0, rows)
    def _wait(t):
        pltpu.make_async_copy(table_hbm.at[0], buf.at[t], sem.at[t]).wait()

    # One sublane/lane-dense scale + store for the whole chunk.
    out_ref[...] = (buf[...] * scale).astype(out_ref.dtype)


def _default_rows_per_step(n_tokens: int, d_model: int, dtype) -> int:
    itemsize = jnp.dtype(dtype).itemsize
    sublane = max(8, 32 // itemsize)          # 8 f32, 16 bf16, 32 int8/fp8
    # Keep gather scratch + double-buffered output well under VMEM (sized so
    # it also fits v7x's 64 MiB per-core VMEM).
    budget = 24 * 1024 * 1024
    rows = max(sublane, budget // (3 * d_model * itemsize))
    rows = min(rows, 512)
    rows = max(sublane, (rows // sublane) * sublane)
    n_round = ((n_tokens + sublane - 1) // sublane) * sublane
    return min(rows, n_round)


def embeddings_forward(token_ids, table, *, rows_per_step=None):
    """token_ids: (B, S) int; table: (vocab, d_model). Returns (B, S, d_model)."""
    B, S = token_ids.shape
    vocab, D = table.shape
    N = B * S
    itemsize = table.dtype.itemsize
    scale = float(math.sqrt(D))

    rows = rows_per_step or _default_rows_per_step(N, D, table.dtype)

    # Flatten, clamp (never let a bad id drive an OOB HBM DMA), pad to a
    # whole number of chunks (pad ids are 0 -> valid row, result sliced off).
    ids_flat = jnp.clip(token_ids.reshape(N).astype(jnp.int32), 0, vocab - 1)
    n_pad = pl.cdiv(N, rows) * rows
    if n_pad != N:
        ids_flat = jnp.pad(ids_flat, (0, n_pad - N))

    block_bytes = rows * D * itemsize
    vmem_needed = 3 * block_bytes             # gather scratch + 2x out buffers
    vmem_limit = int(min(max(4 * vmem_needed, 4 * 1024 * 1024),
                         64 * 1024 * 1024))

    kernel = functools.partial(_embed_gather_kernel, scale=scale, rows=rows)

    out_flat = pl.pallas_call(
        kernel,
        out_shape=jax.ShapeDtypeStruct((n_pad, D), table.dtype),
        grid_spec=pltpu.PrefetchScalarGridSpec(
            num_scalar_prefetch=1,            # ids land in SMEM before the grid
            grid=(n_pad // rows,),
            in_specs=[
                pl.BlockSpec(memory_space=pl.ANY),      # table stays in HBM
            ],
            out_specs=pl.BlockSpec((rows, D), lambda i, ids: (i, 0)),
            scratch_shapes=[
                pltpu.VMEM((rows, D), table.dtype),     # gather buffer
                pltpu.SemaphoreType.DMA((rows,)),       # one sem per row DMA
            ],
        ),
        compiler_params=pltpu.CompilerParams(
            dimension_semantics=("parallel",),          # chunks are independent
            vmem_limit_bytes=vmem_limit,
        ),
        cost_estimate=pl.CostEstimate(
            flops=n_pad * D,
            transcendentals=0,
            bytes_accessed=2 * n_pad * D * itemsize + n_pad * 4,
        ),
    )(ids_flat, table)

    return out_flat[:N].reshape(B, S, D)


if __name__ == "__main__":
    batch, seq = 2, 8
    vocab, d_model = 128, 32

    key = jax.random.PRNGKey(0)
    k_ids, k_tab = jax.random.split(key)
    token_ids = jax.random.randint(k_ids, (batch, seq), 0, vocab, dtype=jnp.int32)
    table = jax.random.normal(k_tab, (vocab, d_model), dtype=jnp.float32)

    out = jax.block_until_ready(embeddings_forward(token_ids, table))
    ref = table[token_ids] * math.sqrt(d_model)
    assert out.shape == (batch, seq, d_model)
    assert jnp.allclose(out, ref, atol=1e-6, rtol=1e-6), "mismatch vs reference"

    # Exercise a lane-dense d_model (128) AND a multi-step grid
    # (rows_per_step=8 < N=16, so the chunk offset math is covered).
    vocab2, d2 = 64, 128
    k2a, k2b = jax.random.split(jax.random.PRNGKey(1))
    ids2 = jax.random.randint(k2a, (batch, seq), 0, vocab2, dtype=jnp.int32)
    tab2 = jax.random.normal(k2b, (vocab2, d2), dtype=jnp.float32)
    out2 = jax.block_until_ready(embeddings_forward(ids2, tab2, rows_per_step=8))
    ref2 = tab2[ids2] * math.sqrt(d2)
    assert jnp.allclose(out2, ref2, atol=1e-6, rtol=1e-6), "mismatch (D=128, multi-step)"

    print("KERNEL_OK")
</pallas_src>

<mosaic_0001>
module attributes {stable_mosaic.version = 11 : i64} {
  func.func @_embed_gather_kernel(%arg0: i32, %arg1: memref<16xi32, #tpu.memory_space<smem>>, %arg2: memref<128x32xf32, #tpu.memory_space<any>>, %arg3: memref<16x32xf32, #tpu.memory_space<vmem>>, %arg4: memref<16x32xf32, #tpu.memory_space<vmem>>, %arg5: memref<16x!tpu.dma_semaphore, #tpu.memory_space<semaphore_mem>>) attributes {dimension_semantics = [#tpu.dimension_semantics<parallel>], iteration_bounds = array<i64: 1>, scalar_prefetch = 1 : i64, scratch_operands = 2 : i64, tpu.core_type = #tpu.core_type<tc>, window_params = [{}, {transform_indices = @transform_1, window_bounds = array<i64: 16, 32>}]} {
    %c16_i32 = arith.constant 16 : i32
    %0 = arith.muli %arg0, %c16_i32 : i32
    %c0_i32 = arith.constant 0 : i32
    %c16_i32_0 = arith.constant 16 : i32
    %1 = arith.addi %c0_i32, %c16_i32_0 : i32
    %c1_i32 = arith.constant 1 : i32
    scf.for %arg6 = %c0_i32 to %1 step %c1_i32  : i32 {
      %c1_i32_9 = arith.constant 1 : i32
      %7 = arith.muli %arg6, %c1_i32_9 : i32
      %c0_i32_10 = arith.constant 0 : i32
      %8 = arith.addi %c0_i32_10, %7 : i32
      %9 = arith.addi %0, %8 : i32
      %10 = arith.index_cast %9 : i32 to index
      %11 = memref.load %arg1[%10] : memref<16xi32, #tpu.memory_space<smem>>
      %c0_i32_11 = arith.constant 0 : i32
      %12 = tpu.memref_slice %arg2[%11, %c0_i32_11] : memref<128x32xf32, #tpu.memory_space<any>> -> memref<1x32xf32, #tpu.memory_space<any>>
      %13 = tpu.memref_squeeze %12 : memref<1x32xf32, #tpu.memory_space<any>> -> memref<32xf32, #tpu.memory_space<any>>
      %c0_i32_12 = arith.constant 0 : i32
      %14 = tpu.memref_slice %arg4[%8, %c0_i32_12] : memref<16x32xf32, #tpu.memory_space<vmem>> -> memref<1x32xf32, #tpu.memory_space<vmem>>
      %15 = tpu.memref_squeeze %14 : memref<1x32xf32, #tpu.memory_space<vmem>> -> memref<32xf32, #tpu.memory_space<vmem>>
      %16 = tpu.memref_slice %arg5[%8] : memref<16x!tpu.dma_semaphore, #tpu.memory_space<semaphore_mem>> -> memref<1x!tpu.dma_semaphore, #tpu.memory_space<semaphore_mem>>
      %17 = tpu.memref_squeeze %16 : memref<1x!tpu.dma_semaphore, #tpu.memory_space<semaphore_mem>> -> memref<!tpu.dma_semaphore, #tpu.memory_space<semaphore_mem>>
      tpu.enqueue_dma source(%13 : memref<32xf32, #tpu.memory_space<any>>) target(%15 : memref<32xf32, #tpu.memory_space<vmem>>) target_semaphore(%17 : memref<!tpu.dma_semaphore, #tpu.memory_space<semaphore_mem>>)
    }
    %c16_i32_1 = arith.constant 16 : i32
    %c0_i32_2 = arith.constant 0 : i32
    %c16_i32_3 = arith.constant 16 : i32
    %2 = arith.addi %c0_i32_2, %c16_i32_3 : i32
    %c1_i32_4 = arith.constant 1 : i32
    scf.for %arg6 = %c0_i32_2 to %2 step %c1_i32_4  : i32 {
      %c1_i32_9 = arith.constant 1 : i32
      %7 = arith.muli %arg6, %c1_i32_9 : i32
      %c0_i32_10 = arith.constant 0 : i32
      %8 = arith.addi %c0_i32_10, %7 : i32
      %c0_i32_11 = arith.constant 0 : i32
      %c0_i32_12 = arith.constant 0 : i32
      %9 = tpu.memref_slice %arg2[%c0_i32_11, %c0_i32_12] : memref<128x32xf32, #tpu.memory_space<any>> -> memref<1x32xf32, #tpu.memory_space<any>>
      %10 = tpu.memref_squeeze %9 : memref<1x32xf32, #tpu.memory_space<any>> -> memref<32xf32, #tpu.memory_space<any>>
      %c0_i32_13 = arith.constant 0 : i32
      %11 = tpu.memref_slice %arg4[%8, %c0_i32_13] : memref<16x32xf32, #tpu.memory_space<vmem>> -> memref<1x32xf32, #tpu.memory_space<vmem>>
      %12 = tpu.memref_squeeze %11 : memref<1x32xf32, #tpu.memory_space<vmem>> -> memref<32xf32, #tpu.memory_space<vmem>>
      %13 = tpu.memref_slice %arg5[%8] : memref<16x!tpu.dma_semaphore, #tpu.memory_space<semaphore_mem>> -> memref<1x!tpu.dma_semaphore, #tpu.memory_space<semaphore_mem>>
      %14 = tpu.memref_squeeze %13 : memref<1x!tpu.dma_semaphore, #tpu.memory_space<semaphore_mem>> -> memref<!tpu.dma_semaphore, #tpu.memory_space<semaphore_mem>>
      tpu.wait_dma2 semaphore(%14 : memref<!tpu.dma_semaphore, #tpu.memory_space<semaphore_mem>>) src(%10 : memref<32xf32, #tpu.memory_space<any>>) dst(%12 : memref<32xf32, #tpu.memory_space<vmem>>)
    }
    %c16_i32_5 = arith.constant 16 : i32
    %c0 = arith.constant 0 : index
    %c0_6 = arith.constant 0 : index
    %3 = vector.load %arg4[%c0, %c0_6] : memref<16x32xf32, #tpu.memory_space<vmem>>, vector<16x32xf32>
    %cst = arith.constant 5.65685415 : f32
    %4 = vector.broadcast %cst : f32 to vector<16x32xf32>
    %5 = arith.mulf %3, %4 : vector<16x32xf32>
    %c0_7 = arith.constant 0 : index
    %c0_8 = arith.constant 0 : index
    %6 = vector.load %arg3[%c0_7, %c0_8] : memref<16x32xf32, #tpu.memory_space<vmem>>, vector<16x32xf32>
    tpu.vector_store %arg3[%c0_7, %c0_8], %5 {strides = array<i32>} : memref<16x32xf32, #tpu.memory_space<vmem>>, vector<16x32xf32>,
    return
  }
  func.func @transform_1(%arg0: i32, %arg1: memref<16xi32, #tpu.memory_space<smem>>) -> (i32, i32) {
    %c0_i32 = arith.constant 0 : i32
    %c0_i32_0 = arith.constant 0 : i32
    return %arg0, %c0_i32 : i32, i32
  }
}

</mosaic_0001>

<bundles_post_ra>
// kernel: tpu_custom_call.1
= control target key start
LH: loop header
LB: loop body
LE: loop exit
PB: predicated region body
PF: predicated region fallthrough
CT: control target
= control target key end

     0   :  { %s319_s12 = smov [#allocation5]   ;;  %s347_s0 = inlined_call_operand.vmem [shape: s32[16], index: 0, kind: input, shape index: {}]   ;;  %s348_s1 = inlined_call_operand.vmem [shape: f32[128,32], index: 1, kind: input, shape index: {}]   ;;  %s349_s2 = inlined_call_operand.hbm [shape: f32[16,32], index: 2, kind: output, shape index: {}]  }
   0x1   :  { %s8_s11 = sshll.u32 %s347_s0, 4  ;;  %s9_s11 = int_to_ptr.vmem [resolvable:$true] %s8_s11 }
   0x2   :  { %11 = dma.vmem_to_smem %s9_s11, 16, %s319_s12, [#allocation4] }
   0x3   :  { %305 = dma.done.wait [#allocation4], 16 }
   0x4   :  { %306 = vsyncadd [#allocation4], 4294967280 }
   0x5   :  { %14 = sfence }
   0x6   :  { %15 = vsyncpa [#allocation7], 0  ;;  %s311_s13 = smov 0  }
   0x7 LB: > { %s24_s14 = sld [smem:[#allocation5 + %s313_s13]]  ;;  %s26_s18 = scalar_lea.vmem [#allocation2], %s313_s13  ;;  %s313_s13 = sphi %s311_s13, %s22_s13  }
   0x8   : > { %s27_s0 = scalar_lea.sflag [#allocation3], %s313_s13 }
   0xd   : > { %s25_s17 = scalar_lea.vmem %s348_s1, %s24_s14 }
   0xe   : > { %v42_v0 = vld [vmem:[%s25_s17] sm:$0x1] }
   0xf   : > { %43 = vst [vmem:[%s26_s18] sm:$0x1] %v42_v0 }
  0x10   : > { %61 = vsyncadd %s27_s0, 16  ;;  %s22_s13 = sadd.s32 1, %s313_s13  }
  0x11   : > { %p19_p0 = scmp.ge.s32.totalorder %s22_s13, 16  }
  0x12   :  { %s315_s19 = smov (%p19_p0), 0  }
  0x13   :  { %21 = sbr.rel (!%p19_p0) target bundleno = 7 (0x7), region = 87 }
  0x18 LB: > { %s68_s20 = scalar_lea.sflag [#allocation3], %s317_s19  ;;  %s317_s19 = sphi %s315_s19, %s67_s19  }
  0x19   : > { %307 = dma.done.wait %s68_s20, 16 }
  0x1a   : > { %308 = vsyncadd %s68_s20, 4294967280  ;;  %s67_s19 = sadd.s32 1, %s317_s19  }
  0x1b   : > { %p64_p1 = scmp.ge.s32.totalorder %s67_s19, 16  }
  0x1c   :  { %v71_v1 = vld [vmem:[#allocation2] sm:$0xff] (%p64_p1)  ;;  %vm75_vm0 = vcmask (%p64_p1), 261120   ;;  %v72_v2 = vld [vmem:[#allocation2 + $0x8] sm:$0xff] (%p64_p1)  ;;  %s84_s23 = sshll.u32 (%p64_p1), %s349_s2, 4  ;;  %s320_s1 = smov (%p64_p1), [#allocation6]   ;;  %s85_s23 = int_to_ptr.hbm [resolvable:$true] %s84_s23 }
  0x1d   :  { %66 = sbr.rel (!%p64_p1) target bundleno = 24 (0x18), region = 98  ;;  %v73_v3 = vmul.f32 (%p64_p1), 5.656854, %v71_v1  ;;  %v74_v4 = vmul.f32 (%p64_p1), 5.656854, %v72_v2  ;;  %s82_s24 = sshll.u32 (%p64_p1), %s320_s1, 4  ;;  %s83_s24 = int_to_ptr.vmem [resolvable:$true] %s82_s24 }
  0x1e   :  { %s321_s25 = smov (%p64_p1), 128   ;;  %s322_s26 = smov (%p64_p1), 8  }
  0x1f   :  { %76 = vst.msk [vmem:[#allocation6] sm:$0xff] (%p64_p1), %vm75_vm0, %v73_v3 }
  0x20   :  { %77 = vst.msk [vmem:[#allocation6 + $0x8] sm:$0xff] (%p64_p1), %vm75_vm0, %v74_v4 }
  0x21   :  { %90 = dma.vmem_to_hbm [thread:$0]  (%p64_p1), %s83_s24, 256, %s85_s23, [#allocation7], %s321_s25, %s321_s25, %s322_s26  }
  0x22   :  { %309 = dma.done.wait [#allocation7], 256  }
  0x23   :  { %310 = vsyncadd [#allocation7], 4294967040 }
  0x24   :  { %95 = vsyncpa [#allocation7], 1 }
  0x25   :  { %96 = vsyncmov [#allocation3] }
  0x28   :  { %s97_s27 = vpop.sfrf %96 }
  0x29   :  { %p225_p2 = scmp.ne.s32.totalorder %s97_s27, 0 }
  0x2b   :  { %101 = shalt.err (%p225_p2)  }
  0x2c   :  { %103 = vsyncmov [#allocation3 + $0x1] }
  0x2f   :  { %s104_s2 = vpop.sfrf %103 }
  0x30   :  { %p226_p3 = scmp.ne.s32.totalorder %s104_s2, 0 }
  0x32   :  { %108 = shalt.err (%p226_p3)  }
  0x33   :  { %110 = vsyncmov [#allocation3 + $0x2] }
  0x36   :  { %s111_s28 = vpop.sfrf %110 }
  0x37   :  { %p227_p4 = scmp.ne.s32.totalorder %s111_s28, 0 }
  0x39   :  { %115 = shalt.err (%p227_p4)  }
  0x3a   :  { %117 = vsyncmov [#allocation3 + $0x3] }
  0x3d   :  { %s118_s29 = vpop.sfrf %117 }
  0x3e   :  { %p228_p5 = scmp.ne.s32.totalorder %s118_s29, 0 }
  0x40   :  { %122 = shalt.err (%p228_p5)  }
  0x41   :  { %124 = vsyncmov [#allocation3 + $0x4] }
  0x44   :  { %s125_s30 = vpop.sfrf %124 }
  0x45   :  { %p229_p6 = scmp.ne.s32.totalorder %s125_s30, 0 }
  0x47   :  { %129 = shalt.err (%p229_p6)  }
  0x48   :  { %131 = vsyncmov [#allocation3 + $0x5] }
  0x4b   :  { %s132_s3 = vpop.sfrf %131 }
  0x4c   :  { %p230_p7 = scmp.ne.s32.totalorder %s132_s3, 0 }
  0x4e   :  { %136 = shalt.err (%p230_p7)  }
  0x4f   :  { %138 = vsyncmov [#allocation3 + $0x6] }
  0x52   :  { %s139_s4 = vpop.sfrf %138 }
  0x53   :  { %p231_p8 = scmp.ne.s32.totalorder %s139_s4, 0 }
  0x55   :  { %143 = shalt.err (%p231_p8)  }
  0x56   :  { %145 = vsyncmov [#allocation3 + $0x7] }
  0x59   :  { %s146_s5 = vpop.sfrf %145 }
  0x5a   :  { %p232_p9 = scmp.ne.s32.totalorder %s146_s5, 0 }
  0x5c   :  { %150 = shalt.err (%p232_p9)  }
  0x5d   :  { %152 = vsyncmov [#allocation3 + $0x8] }
  0x60   :  { %s153_s6 = vpop.sfrf %152 }
  0x61   :  { %p233_p10 = scmp.ne.s32.totalorder %s153_s6, 0 }
  0x63   :  { %157 = shalt.err (%p233_p10)  }
  0x64   :  { %159 = vsyncmov [#allocation3 + $0x9] }
  0x67   :  { %s160_s7 = vpop.sfrf %159 }
  0x68   :  { %p234_p11 = scmp.ne.s32.totalorder %s160_s7, 0 }
  0x6a   :  { %164 = shalt.err (%p234_p11)  }
  0x6b   :  { %166 = vsyncmov [#allocation3 + $0xa] }
  0x6e   :  { %s167_s8 = vpop.sfrf %166 }
  0x6f   :  { %p235_p12 = scmp.ne.s32.totalorder %s167_s8, 0 }
  0x71   :  { %171 = shalt.err (%p235_p12)  }
  0x72   :  { %173 = vsyncmov [#allocation3 + $0xb] }
  0x75   :  { %s174_s9 = vpop.sfrf %173 }
  0x76   :  { %p236_p13 = scmp.ne.s32.totalorder %s174_s9, 0 }
  0x78   :  { %178 = shalt.err (%p236_p13)  }
  0x79   :  { %180 = vsyncmov [#allocation3 + $0xc] }
  0x7c   :  { %s181_s10 = vpop.sfrf %180 }
  0x7d   :  { %p237_p0 = scmp.ne.s32.totalorder %s181_s10, 0 }
  0x7f   :  { %185 = shalt.err (%p237_p0)  }
  0x80   :  { %187 = vsyncmov [#allocation3 + $0xd] }
  0x83   :  { %s188_s11 = vpop.sfrf %187 }
  0x84   :  { %p238_p1 = scmp.ne.s32.totalorder %s188_s11, 0 }
  0x86   :  { %192 = shalt.err (%p238_p1)  }
  0x87   :  { %194 = vsyncmov [#allocation3 + $0xe] }
  0x8a   :  { %s195_s12 = vpop.sfrf %194 }
  0x8b   :  { %p239_p2 = scmp.ne.s32.totalorder %s195_s12, 0 }
  0x8d   :  { %199 = shalt.err (%p239_p2)  }
  0x8e   :  { %201 = vsyncmov [#allocation3 + $0xf] }
  0x91   :  { %s202_s13 = vpop.sfrf %201 }
  0x92   :  { %p240_p3 = scmp.ne.s32.totalorder %s202_s13, 0 }
  0x94   :  { %206 = shalt.err (%p240_p3)  }

</bundles_post_ra>
